<compile_context>
chip_gen: v7x
topology: tpu7x:2x2x1
jax: 0.10.0
libtpu: 0.0.40
codegen_flags: <defaults>
</compile_context>

<pallas_src>
import functools

import jax
import jax.numpy as jnp
import numpy as np
from jax.experimental import pallas as pl
from jax.experimental.pallas import tpu as pltpu


# --------------------------------------------------------------------------- host constants
def _interp_matrix(n_in: int, n_out: int) -> np.ndarray:
    """(n_out, n_in) 1-D linear-interp operator, PyTorch bilinear align_corners=True."""
    if n_out == 1:
        src = np.zeros((1,), np.float64)
    else:
        src = np.arange(n_out, dtype=np.float64) * (n_in - 1) / (n_out - 1)
    lo = np.clip(np.floor(src).astype(np.int64), 0, n_in - 1)
    hi = np.minimum(lo + 1, n_in - 1)
    frac = src - lo
    w = np.zeros((n_out, n_in), np.float64)
    w[np.arange(n_out), lo] += 1.0 - frac
    w[np.arange(n_out), hi] += frac
    return w.astype(np.float32)


def _vmem_limit_bytes() -> int:
    """Generation-aware scoped-VMEM limit (v5e/v6e: 128 MiB physical, v7x: 64 MiB)."""
    try:
        cap = int(getattr(pltpu.get_tpu_info(), "vmem_capacity_bytes", 0)) or (64 << 20)
    except Exception:  # interpret mode / older jax -> assume the smallest (v7x) size
        cap = 64 << 20
    return min(cap * 3 // 4, 100 << 20)


def _pick_tbc(c2, c1, n_batch, step_bytes, io_bytes, budget, *, multiple_of=1, cap=None):
    """Channel-block size for the fused kernel.

    Constraints: divides C2 (so the x1 half of the fused output starts block-aligned at
    channel offset C2), <= C1 (no input block wider than the x1 channel dim), optional
    sublane multiple (flat layout) and cap (bounds the static row-pass unroll).
    Picks the largest block whose honestly-accounted VMEM footprint fits `budget`,
    preferring >= 4 total grid steps (>= 2 per v7x TensorCore) when per-step traffic
    stays >= ~1 MiB.  Returns None if no candidate exists.
    """
    hi = min(c2, c1) if c1 else c2
    if cap is not None:
        hi = min(hi, cap)
    divs = [d for d in range(1, hi + 1) if c2 % d == 0 and d % multiple_of == 0]
    if not divs:
        return None
    # Best-effort fallback: with honest accounting this only triggers for spatial maps so
    # large that even a single channel slice exceeds the budget (no spatial tiling here).
    fit = [d for d in divs if step_bytes(d) <= budget] or [min(divs)]

    def steps(d):
        return n_batch * (c2 // d + -(-c1 // d))

    best = max(fit)
    if steps(best) < 4:
        multi = [d for d in fit if steps(d) >= 4 and io_bytes(d) >= (1 << 20)]
        if multi:
            best = max(multi)
    return best


# --------------------------------------------------------------------------- kernels
def _fused_kron_kernel(x2_ref, x1_ref, m_ref, o_ref, *, nb2):
    """Grid step (n, j).  j < nb2: pass an x2 channel block through to the output.
    j >= nb2: upsample an x1 channel block with ONE lane-dense MXU matmul against the
    Kronecker operator and write it at its final channel offset (concat fused)."""
    j = pl.program_id(1)

    @pl.when(j < nb2)
    def _copy_skip():
        o_ref[...] = x2_ref[...].astype(o_ref.dtype)

    @pl.when(j >= nb2)
    def _upsample():
        # activations stay in their input dtype; f32 accumulation on the MXU
        up = jnp.dot(x1_ref[...], m_ref[...], preferred_element_type=jnp.float32)
        o_ref[...] = up.astype(o_ref.dtype)


def _fused_factored_kernel(x2_ref, x1_ref, wy_ref, wxt_ref, o_ref, *,
                           nb2, dst, src, zero_fill):
    """Grid step (n, j).  j < nb2: copy x2.  j >= nb2: factored bilinear upsample:
    column pass = ONE 2-D MXU matmul with M = TB*H (lane-dense N = W2); row pass =
    TB per-slice (H2,H)@(H,W2) matmuls sharing a single VMEM copy of the weights.
    The result is placed (static pad/crop window) at its final channel offset."""
    j = pl.program_id(1)

    @pl.when(j < nb2)
    def _copy_skip():
        o_ref[...] = x2_ref[...].astype(o_ref.dtype)

    @pl.when(j >= nb2)
    def _upsample():
        tb, h, w = x1_ref.shape
        w2 = wxt_ref.shape[1]
        x = x1_ref[...]                                        # input dtype, no f32 upcast
        t = jnp.dot(x.reshape(tb * h, w), wxt_ref[...],
                    preferred_element_type=jnp.float32)        # (TB*H, W2)
        t = t.reshape(tb, h, w2).astype(x.dtype)               # back to activation dtype
        if zero_fill:                                          # only when F.pad adds zeros
            o_ref[...] = jnp.zeros(o_ref.shape, o_ref.dtype)
        dy0, dy1, dx0, dx1 = dst
        sy0, sy1, sx0, sx1 = src
        wy = wy_ref[...]                                       # single shared weight copy
        for b in range(tb):                                    # static unroll (TB <= 32)
            r = jnp.dot(wy, t[b], preferred_element_type=jnp.float32)   # (H2, W2)
            o_ref[b, dy0:dy1, dx0:dx1] = r[sy0:sy1, sx0:sx1].astype(o_ref.dtype)


# --------------------------------------------------------------------------- wrapper
def upsample_forward(x1, x2):
    """Pallas equivalent of UpSample(bilinear=True).forward(x1, x2)."""
    n, c1, h, w = x1.shape
    n2, c2, hout, wout = x2.shape
    assert n == n2, "batch dims must match"
    h2, w2 = 2 * h, 2 * w
    dy, dx = hout - h2, wout - w2
    c_total = c2 + c1

    out_dtype = jnp.result_type(x1.dtype, x2.dtype)
    act_is_bf16 = x1.dtype == jnp.bfloat16
    w_dtype = jnp.bfloat16 if act_is_bf16 else jnp.float32
    a_item = np.dtype(x1.dtype).itemsize
    o_item = np.dtype(out_dtype).itemsize
    w_item = np.dtype(w_dtype).itemsize

    wy_np = _interp_matrix(h, h2)   # (H2, H)
    wx_np = _interp_matrix(w, w2)   # (W2, W)

    vmem_limit = _vmem_limit_bytes()
    compiler_params = pltpu.CompilerParams(
        dimension_semantics=("parallel", "parallel"),
        vmem_limit_bytes=vmem_limit,
    )

    s_in, s_up = h * w, h2 * w2
    kron_bytes = s_in * s_up * w_item
    # Kron (single fused matmul, flattened lane-dense layout) only pays when the natural 4-D
    # store would be lane-sparse (W2 < 128) and the FLOP-inflated dense operator stays
    # HBM-bound (dtype-aware cap; tighter for f32 because of v5e's f32 MXU rate), fits the
    # weight budget, and there is no spatial pad (flat layout cannot express it).
    hw_cap = 1024 if act_is_bf16 else 256
    use_kron = (dy == 0 and dx == 0 and w2 < 128 and s_in <= hw_cap
                and kron_bytes <= min(vmem_limit // 4, 16 << 20))

    if use_kron:
        budget = max(vmem_limit - kron_bytes - (2 << 20), 1 << 20)

        def step_bytes(d):     # 2x-buffered x1/x2/out blocks + f32 matmul result
            return 2 * d * (s_in * a_item + 2 * s_up * o_item) + d * s_up * 4

        def io_bytes(d):
            return d * (s_in * a_item + 2 * s_up * o_item)

        # flat (3-D) layout: channel is the sublane dim of the block -> multiple of 8
        tbc = _pick_tbc(c2, c1, n, step_bytes, io_bytes, budget, multiple_of=8)
        if tbc is not None:
            nb2 = c2 // tbc
            nb1 = -(-c1 // tbc)
            mkron = jnp.asarray(np.kron(wy_np, wx_np).T.copy(), dtype=w_dtype)  # (S_in, S_up)
            x1_f = x1.reshape(n, c1, s_in)       # free layout plumbing (contiguous reshapes)
            x2_f = x2.reshape(n, c2, s_up)
            kern = functools.partial(_fused_kron_kernel, nb2=nb2)
            out = pl.pallas_call(
                kern,
                out_shape=jax.ShapeDtypeStruct((n, c_total, s_up), out_dtype),
                grid_spec=pltpu.PrefetchScalarGridSpec(
                    num_scalar_prefetch=0,
                    grid=(n, nb2 + nb1),
                    in_specs=[
                        pl.BlockSpec((None, tbc, s_up),
                                     lambda b, j: (b, jnp.minimum(j, nb2 - 1), 0)),
                        pl.BlockSpec((None, tbc, s_in),
                                     lambda b, j: (b, jnp.maximum(j - nb2, 0), 0)),
                        pl.BlockSpec((s_in, s_up), lambda b, j: (0, 0),
                                     pipeline_mode=pl.Buffered(1)),   # resident weights
                    ],
                    out_specs=pl.BlockSpec((None, tbc, s_up), lambda b, j: (b, j, 0)),
                ),
                compiler_params=compiler_params,
            )(x2_f, x1_f, mkron)
            return out.reshape(n, c_total, hout, wout)

    # ---- default: fused 4-D factored path (lane-dense when W2 >= 128; handles any pad/crop)
    weight_bytes = (h2 * h + w * w2) * w_item
    budget = max(vmem_limit - weight_bytes - (2 << 20), 1 << 20)

    def step_bytes(d):
        return (2 * d * (h * w * a_item + 2 * hout * wout * o_item)   # 2x-buffered blocks
                + d * h * w2 * (4 + a_item)                           # col-pass f32 + cast copy
                + h2 * w2 * 4)                                        # per-slice f32 result

    def io_bytes(d):
        return d * (h * w * a_item + 2 * hout * wout * o_item)

    tbc = _pick_tbc(c2, c1, n, step_bytes, io_bytes, budget, multiple_of=1, cap=32)
    if tbc is None:
        tbc = 1
    nb2 = c2 // tbc
    nb1 = -(-c1 // tbc)

    # Static placement of the (H2, W2) upsample inside the (Hout, Wout) window.
    # F.pad semantics: positive widths pad with zeros, negative widths crop.
    p_t, p_b = dy // 2, dy - dy // 2
    p_l, p_r = dx // 2, dx - dx // 2
    dst = (max(p_t, 0), hout - max(p_b, 0), max(p_l, 0), wout - max(p_r, 0))
    src = (max(-p_t, 0), h2 - max(-p_b, 0), max(-p_l, 0), w2 - max(-p_r, 0))
    zero_fill = dst != (0, hout, 0, wout)

    wy = jnp.asarray(wy_np, dtype=w_dtype)             # (H2, H)
    wxt = jnp.asarray(wx_np.T.copy(), dtype=w_dtype)   # (W, W2)
    kern = functools.partial(_fused_factored_kernel, nb2=nb2, dst=dst, src=src,
                             zero_fill=zero_fill)
    return pl.pallas_call(
        kern,
        out_shape=jax.ShapeDtypeStruct((n, c_total, hout, wout), out_dtype),
        grid_spec=pltpu.PrefetchScalarGridSpec(
            num_scalar_prefetch=0,
            grid=(n, nb2 + nb1),
            in_specs=[
                pl.BlockSpec((None, tbc, hout, wout),
                             lambda b, j: (b, jnp.minimum(j, nb2 - 1), 0, 0)),
                pl.BlockSpec((None, tbc, h, w),
                             lambda b, j: (b, jnp.maximum(j - nb2, 0), 0, 0)),
                pl.BlockSpec((h2, h), lambda b, j: (0, 0),
                             pipeline_mode=pl.Buffered(1)),            # resident weights
                pl.BlockSpec((w, w2), lambda b, j: (0, 0),
                             pipeline_mode=pl.Buffered(1)),
            ],
            out_specs=pl.BlockSpec((None, tbc, hout, wout), lambda b, j: (b, j, 0, 0)),
        ),
        compiler_params=compiler_params,
    )(x2, x1, wy, wxt)


# --------------------------------------------------------------------------- reference & test
def _reference(x1, x2):
    x1 = np.asarray(x1, np.float64)
    x2 = np.asarray(x2, np.float64)
    n, c, h, w = x1.shape
    wy = _interp_matrix(h, 2 * h).astype(np.float64)
    wx = _interp_matrix(w, 2 * w).astype(np.float64)
    up = np.einsum("oh,nchw,pw->ncop", wy, x1, wx)
    dy = x2.shape[2] - up.shape[2]
    dx = x2.shape[3] - up.shape[3]
    pt, pb = dy // 2, dy - dy // 2
    pL, pr = dx // 2, dx - dx // 2
    up = up[:, :, max(-pt, 0): up.shape[2] - max(-pb, 0),
            max(-pL, 0): up.shape[3] - max(-pr, 0)]
    up = np.pad(up, ((0, 0), (0, 0),
                     (max(pt, 0), max(pb, 0)), (max(pL, 0), max(pr, 0))))
    return np.concatenate([x2, up], axis=1)


if __name__ == "__main__":
    key = jax.random.PRNGKey(0)
    k = jax.random.split(key, 8)
    fwd = jax.jit(upsample_forward)

    # A) fused flat Kronecker path: small map, lane-dense flattened output, C2 % 8 == 0.
    x1 = jax.random.normal(k[0], (2, 8, 8, 8), dtype=jnp.float32)
    x2 = jax.random.normal(k[1], (2, 8, 16, 16), dtype=jnp.float32)
    out = jax.block_until_ready(fwd(x1, x2))
    assert out.shape == (2, 16, 16, 16), out.shape
    np.testing.assert_allclose(np.asarray(out), _reference(x1, x2), rtol=1e-4, atol=1e-4)

    # B) fused 4-D factored path: lane-dense W2 = 128, partial x1 channel block handling.
    x1b = jax.random.normal(k[2], (1, 4, 16, 64), dtype=jnp.float32)
    x2b = jax.random.normal(k[3], (1, 6, 32, 128), dtype=jnp.float32)
    outb = jax.block_until_ready(fwd(x1b, x2b))
    assert outb.shape == (1, 10, 32, 128), outb.shape
    np.testing.assert_allclose(np.asarray(outb), _reference(x1b, x2b), rtol=1e-4, atol=1e-4)

    # C) factored path with in-kernel zero padding (odd target spatial size).
    x1c = jax.random.normal(k[4], (2, 4, 8, 8), dtype=jnp.float32)
    x2c = jax.random.normal(k[5], (2, 4, 17, 17), dtype=jnp.float32)
    outc = jax.block_until_ready(fwd(x1c, x2c))
    assert outc.shape == (2, 8, 17, 17), outc.shape
    np.testing.assert_allclose(np.asarray(outc), _reference(x1c, x2c), rtol=1e-4, atol=1e-4)

    # D) bf16 activations stay bf16 into the MXU (bf16 weights, f32 accumulation).
    x1d = jax.random.normal(k[6], (2, 8, 8, 8), dtype=jnp.bfloat16)
    x2d = jax.random.normal(k[7], (2, 8, 16, 16), dtype=jnp.bfloat16)
    outd = jax.block_until_ready(fwd(x1d, x2d))
    assert outd.shape == (2, 16, 16, 16) and outd.dtype == jnp.bfloat16
    np.testing.assert_allclose(np.asarray(outd, np.float64), _reference(x1d, x2d),
                               rtol=5e-2, atol=5e-2)

    print("KERNEL_OK")
</pallas_src>

<mosaic_0001>
module attributes {stable_mosaic.version = 11 : i64} {
  func.func @_fused_kron_kernel(%arg0: i32, %arg1: i32, %arg2: memref<1x8x256xf32, #tpu.memory_space<vmem>>, %arg3: memref<1x8x64xf32, #tpu.memory_space<vmem>>, %arg4: memref<64x256xf32, #tpu.memory_space<vmem>>, %arg5: memref<1x8x256xf32, #tpu.memory_space<vmem>>) attributes {dimension_semantics = [#tpu.dimension_semantics<parallel>, #tpu.dimension_semantics<parallel>], iteration_bounds = array<i64: 2, 2>, scalar_prefetch = 0 : i64, scratch_operands = 0 : i64, tpu.core_type = #tpu.core_type<tc>, window_params = [{transform_indices = @transform_0, window_bounds = array<i64: 1, 8, 256>}, {transform_indices = @transform_1, window_bounds = array<i64: 1, 8, 64>}, {pipeline_mode = #tpu.pipeline_mode<synchronous>, transform_indices = @transform_2, window_bounds = array<i64: 64, 256>}, {transform_indices = @transform_3, window_bounds = array<i64: 1, 8, 256>}]} {
    %c1_i32 = arith.constant 1 : i32
    %0 = arith.cmpi slt, %arg1, %c1_i32 : i32
    %1 = arith.extui %0 : i1 to i32
    %c0_i32 = arith.constant 0 : i32
    %2 = arith.cmpi ne, %1, %c0_i32 : i32
    scf.if %2 {
      %c0 = arith.constant 0 : index
      %c0_2 = arith.constant 0 : index
      %c0_3 = arith.constant 0 : index
      %6 = vector.load %arg2[%c0, %c0_2, %c0_3] : memref<1x8x256xf32, #tpu.memory_space<vmem>>, vector<1x8x256xf32>
      %7 = vector.shape_cast %6 : vector<1x8x256xf32> to vector<8x256xf32>
      %c0_4 = arith.constant 0 : index
      %c0_5 = arith.constant 0 : index
      %c0_6 = arith.constant 0 : index
      %8 = vector.load %arg5[%c0_4, %c0_5, %c0_6] : memref<1x8x256xf32, #tpu.memory_space<vmem>>, vector<1x8x256xf32>
      %9 = vector.shape_cast %8 : vector<1x8x256xf32> to vector<8x256xf32>
      %10 = vector.shape_cast %7 : vector<8x256xf32> to vector<1x8x256xf32>
      tpu.vector_store %arg5[%c0_4, %c0_5, %c0_6], %10 {strides = array<i32>} : memref<1x8x256xf32, #tpu.memory_space<vmem>>, vector<1x8x256xf32>,
    } else {
    }
    %c1_i32_0 = arith.constant 1 : i32
    %3 = arith.cmpi sge, %arg1, %c1_i32_0 : i32
    %4 = arith.extui %3 : i1 to i32
    %c0_i32_1 = arith.constant 0 : i32
    %5 = arith.cmpi ne, %4, %c0_i32_1 : i32
    scf.if %5 {
      %c0 = arith.constant 0 : index
      %c0_2 = arith.constant 0 : index
      %c0_3 = arith.constant 0 : index
      %6 = vector.load %arg3[%c0, %c0_2, %c0_3] : memref<1x8x64xf32, #tpu.memory_space<vmem>>, vector<1x8x64xf32>
      %7 = vector.shape_cast %6 : vector<1x8x64xf32> to vector<8x64xf32>
      %c0_4 = arith.constant 0 : index
      %c0_5 = arith.constant 0 : index
      %8 = vector.load %arg4[%c0_4, %c0_5] : memref<64x256xf32, #tpu.memory_space<vmem>>, vector<64x256xf32>
      %cst = arith.constant dense<0.000000e+00> : vector<8x256xf32>
      %9 = tpu.matmul %7, %8, %cst {dimension_numbers = #tpu.dot_dimension_numbers<[1], [0], [0], [1], [0, 0, 1, 1], [], []>} : vector<8x64xf32>, vector<64x256xf32>, vector<8x256xf32> -> vector<8x256xf32>
      %c0_6 = arith.constant 0 : index
      %c0_7 = arith.constant 0 : index
      %c0_8 = arith.constant 0 : index
      %10 = vector.load %arg5[%c0_6, %c0_7, %c0_8] : memref<1x8x256xf32, #tpu.memory_space<vmem>>, vector<1x8x256xf32>
      %11 = vector.shape_cast %10 : vector<1x8x256xf32> to vector<8x256xf32>
      %12 = vector.shape_cast %9 : vector<8x256xf32> to vector<1x8x256xf32>
      tpu.vector_store %arg5[%c0_6, %c0_7, %c0_8], %12 {strides = array<i32>} : memref<1x8x256xf32, #tpu.memory_space<vmem>>, vector<1x8x256xf32>,
    } else {
    }
    return
  }
  func.func @transform_0(%arg0: i32, %arg1: i32) -> (i32, i32, i32) {
    %c0_i32 = arith.constant 0 : i32
    %0 = arith.minsi %arg1, %c0_i32 : i32
    %c0_i32_0 = arith.constant 0 : i32
    %c0_i32_1 = arith.constant 0 : i32
    return %arg0, %0, %c0_i32_0 : i32, i32, i32
  }
  func.func @transform_1(%arg0: i32, %arg1: i32) -> (i32, i32, i32) {
    %c1_i32 = arith.constant 1 : i32
    %0 = arith.subi %arg1, %c1_i32 : i32
    %c0_i32 = arith.constant 0 : i32
    %1 = arith.maxsi %0, %c0_i32 : i32
    %c0_i32_0 = arith.constant 0 : i32
    %c0_i32_1 = arith.constant 0 : i32
    return %arg0, %1, %c0_i32_0 : i32, i32, i32
  }
  func.func @transform_2(%arg0: i32, %arg1: i32) -> (i32, i32) {
    %c0_i32 = arith.constant 0 : i32
    %c0_i32_0 = arith.constant 0 : i32
    %c0_i32_1 = arith.constant 0 : i32
    return %c0_i32, %c0_i32_0 : i32, i32
  }
  func.func @transform_3(%arg0: i32, %arg1: i32) -> (i32, i32, i32) {
    %c0_i32 = arith.constant 0 : i32
    %c0_i32_0 = arith.constant 0 : i32
    return %arg0, %arg1, %c0_i32 : i32, i32, i32
  }
}

</mosaic_0001>

<bundles_post_ra>
// kernel: upsample_forward.1
= control target key start
LH: loop header
LB: loop body
LE: loop exit
PB: predicated region body
PF: predicated region fallthrough
CT: control target
= control target key end

     0   :  { %s632_s12 = smov 0   ;;  %s634_s13 = smov 0   ;;  %s754_s0 = inlined_call_operand.vmem [shape: f32[2,8,256], index: 0, kind: input, shape index: {}]   ;;  %s755_s1 = inlined_call_operand.vmem [shape: f32[2,8,64], index: 1, kind: input, shape index: {}]   ;;  %s756_s2 = inlined_call_operand.vmem [shape: f32[64,256], index: 2, kind: input, shape index: {}]   ;;  %s757_s3 = inlined_call_operand.vmem [shape: f32[2,16,256], index: 3, kind: output, shape index: {}]  }
   0x1   :  { %s636_s14 = smov 0   ;;  %s638_s15 = smov 0  }
   0x2   :  { %s640_s16 = smov 0  }
   0x3 LB: > { %s22_s17 = sadd.s32 1, %s601_s14  ;;  %s25_s18 = sadd.s32 1, %s605_s15  ;;  %s609_s16 = sphi %s640_s16, %s13_s16   ;;  %s605_s15 = sphi %s638_s15, %s761_s15   ;;  %s601_s14 = sphi %s636_s14, %s760_s14   ;;  %s597_s13 = sphi %s634_s13, %s759_s13   ;;  %s593_s12 = sphi %s632_s12, %s758_s12  }
   0x4   : > { %p23_p0 = scmp.ge.s32.totalorder %s22_s17, 2  ;;  %p492_p1 = scmp.ge.s32.totalorder %s609_s16, 1 }
   0x5   : > { %p191_p2 = scmp.lt.s32.totalorder %s609_s16, 5 }
   0x6   : > { %s763_s17 = smov (%p23_p0, %s22_s17), 0  ;;  %s765_s18 = smov (!%p23_p0, %s25_s18), %s605_s15 }
   0x7   : > { %p192_p3 = pnand %p492_p1, %p191_p2  ;;  %p27_p4 = scmp.ge.s32.totalorder %s765_s18, 2 }
   0x8   : > { %p235_p5 = scmp.lt.s32.totalorder (!%p192_p3), %s593_s12, 0  ;;  %p237_p6 = scmp.lt.s32.totalorder (!%p192_p3), %s597_s13, 1 }
   0x9   : > { %s767_s18 = smov (%p27_p4, %s765_s18), 0  ;;  %195 = sbr.rel (%p192_p3) target bundleno = 263 (0x107), region = 32 }
   0xa   : > { %p263_p7 = scmp.lt.s32.totalorder (!%p192_p3), %s593_s12, 1  ;;  %p509_p8 = scmp.ge.s32.totalorder (!%p192_p3), %s593_s12, 1 }
  0x10   : > { %s236_s19 = scalar_select %p235_p5, %s593_s12, 0 }
  0x11   : > { %s769_s13 = smov (!%p237_p6, %s597_s13), 1 }
  0x12   : > { %s771_s19 = smov (!%p235_p5, %s236_s19), 0  ;;  %s497_s20 = sshll.u32 %s769_s13, 1 }
  0x13   : > { %s505_s21 = sshll.u32 %s769_s13, 3  ;;  %s496_s22 = sshll.u32 %s771_s19, 1 }
  0x14   : > { %s670_s25 = scalar_lea.vmem %s755_s1, %s505_s21  ;;  %s243_s26 = sadd.s32 %s497_s20, %s496_s22 }
  0x15   : > { %s498_s27 = sshll.u32 %s243_s26, 3  ;;  %s507_s4 = sshll.u32 %s769_s13, 2 }
  0x16   : > { %s245_s30 = scalar_lea.vmem %s754_s0, %s498_s27  ;;  %273 = sbr.rel (%p509_p8) target bundleno = 30 (0x1e), region = 36 }
  0x17   : > { %s264_s5 = scalar_select %p263_p7, %s593_s12, 1 }
  0x18   : > { %v274_v0 = vld [vmem:[%s245_s30] sm:$0xff] (!%p509_p8)  ;;  %v275_v1 = vld [vmem:[%s245_s30 + $0x8] sm:$0xff] (!%p509_p8) }
  0x19   : > { %s506_s6 = sshll.u32 %s264_s5, 1 }
  0x1a   : > { %s267_s7 = sadd.s32 %s507_s4, %s506_s6 }
  0x1b   : > { %s508_s8 = sshll.u32 %s267_s7, 3 }
  0x1c   : > { %s681_s11 = scalar_lea.vmem %s757_s3, %s508_s8 }
  0x1d   : > { %276 = vst [vmem:[%s681_s11] sm:$0xff] %v274_v0  ;;  %277 = vst [vmem:[%s681_s11 + $0x8] sm:$0xff] %v275_v1 }
  0x1e PF: > { %281 = sbr.rel (%p263_p7) target bundleno = 263 (0x107), region = 40  ;;  %v284_v2 = vld [vmem:[%s756_s2 + $0x8] sm:$0xff] (!%p263_p7)  ;;  %v286_v3 = vld [vmem:[%s756_s2 + $0x18] sm:$0xff] (!%p263_p7)  ;;  %v283_v4 = vld [vmem:[%s756_s2] sm:$0xff] (!%p263_p7)  ;;  %v611_v9 = vmov (!%p263_p7), 0.0   ;;  %vm299_vm0 = vcmask (!%p263_p7), 523264  }
  0x1f   : > { %v514_v5 = vpack.c.bf16 (!%p263_p7), %v286_v3, %v284_v2  ;;  %v285_v6 = vld [vmem:[%s756_s2 + $0x10] sm:$0xff] (!%p263_p7)  ;;  %v288_v7 = vld [vmem:[%s756_s2 + $0x28] sm:$0xff] (!%p263_p7)  ;;  %v290_v8 = vld [vmem:[%s756_s2 + $0x38] sm:$0xff] (!%p263_p7)  ;;  %367 = vmatprep.mubr.f32.mxu0 (!%p263_p7), %v611_v9 }
  0x20   : > { %v516_v10 = vpack.c.bf16 (!%p263_p7), %v285_v6, %v283_v4  ;;  %v518_v11 = vpack.c.bf16 (!%p263_p7), %v290_v8, %v288_v7  ;;  %v287_v12 = vld [vmem:[%s756_s2 + $0x20] sm:$0xff] (!%p263_p7)  ;;  %v289_v13 = vld [vmem:[%s756_s2 + $0x30] sm:$0xff] (!%p263_p7)  ;;  %v292_v14 = vld [vmem:[%s756_s2 + $0x48] sm:$0xff] (!%p263_p7) }
  0x21   : > { %515 = vmatprep.subr.bf16.mxu0 (!%p263_p7), %v514_v5  ;;  %v294_v15 = vld [vmem:[%s756_s2 + $0x58] sm:$0xff] (!%p263_p7)  ;;  %v520_v16 = vpack.c.bf16 (!%p263_p7), %v289_v13, %v287_v12  ;;  %v291_v18 = vld [vmem:[%s756_s2 + $0x40] sm:$0xff] (!%p263_p7)  ;;  %v293_v19 = vld [vmem:[%s756_s2 + $0x50] sm:$0xff] (!%p263_p7) }
  0x22   : > { %517 = vmatpush1.bf16.msra.mxu0 (!%p263_p7), %v516_v10  ;;  %v522_v17 = vpack.c.bf16 (!%p263_p7), %v294_v15, %v292_v14  ;;  %v296_v20 = vld [vmem:[%s756_s2 + $0x68] sm:$0xff] (!%p263_p7)  ;;  %v298_v21 = vld [vmem:[%s756_s2 + $0x78] sm:$0xff] (!%p263_p7)  ;;  %v524_v22 = vpack.c.bf16 (!%p263_p7), %v293_v19, %v291_v18  ;;  %v295_v24 = vld [vmem:[%s756_s2 + $0x60] sm:$0xff] (!%p263_p7) }
  0x23   : > { %519 = vmatprep.subr.bf16.mxu0 (!%p263_p7), %v518_v11  ;;  %v526_v23 = vpack.c.bf16 (!%p263_p7), %v298_v21, %v296_v20  ;;  %v297_v25 = vld [vmem:[%s756_s2 + $0x70] sm:$0xff] (!%p263_p7)  ;;  %v282_v27 = vld [vmem:[%s670_s25] sm:$0xff] (!%p263_p7) }
  0x24   : > { %v528_v26 = vpack.c.bf16 (!%p263_p7), %v297_v25, %v295_v24 }
  0x26   : > { %521 = vmatpush1.bf16.msra.mxu0 %v520_v16 }
  0x27   : > { %523 = vmatprep.subr.bf16.mxu0 %v522_v17 }
  0x2a   : > { %525 = vmatpush1.bf16.msra.mxu0 %v524_v22 }
  0x2b   : > { %527 = vmatprep.subr.bf16.mxu0 %v526_v23 }
  0x2e   : > { %529 = vmatpush1.bf16.msra.mxu0 %v528_v26 }
  0x31   : > { %511 = vmatmul.mubr.msk.f32.vlgmr.msra.gmra.mrb[0].mxu0 %vm299_vm0, %v282_v27 }
 0x104   : > { %v369_v28 = vpop.f32.mrb[0].mxu0 }
 0x105   : > { %374 = vst [vmem:[%s681_s11] sm:$0xff] %v369_v28  ;;  %v371_v29 = vpop.f32.mrb[1].mxu0 }
 0x106   : > { %375 = vst [vmem:[%s681_s11 + $0x8] sm:$0xff] %v371_v29 }
 0x107 PF: > { %s13_s16 = sadd.s32 1, %s609_s16   ;;  %s758_s12 = smov %s601_s14 }
 0x108   : > { %p10_p9 = scmp.ge.s32.totalorder %s13_s16, 6   ;;  %s759_s13 = smov %s605_s15 }
 0x109   : > { %s760_s14 = smov %s763_s17  ;;  %s761_s15 = smov %s767_s18 }
 0x10a   :  { %12 = sbr.rel (!%p10_p9) target bundleno = 3 (0x3), region = 73 }

</bundles_post_ra>
